<compile_context>
chip_gen: v7x
topology: tpu7x:2x2x1
jax: 0.10.0
libtpu: 0.0.40
codegen_flags: <defaults>
</compile_context>

<pallas_src>
import functools
import math

import jax
import jax.numpy as jnp
from jax.experimental import pallas as pl
from jax.experimental.pallas import tpu as pltpu


def _make_pe_table(d_model: int, max_len: int) -> jnp.ndarray:
    """Sinusoidal table, shape (max_len, 1, d_model), identical to the module's buffer."""
    assert d_model % 2 == 0, "d_model must be even (as the PyTorch module assumes)"
    position = jnp.arange(max_len, dtype=jnp.float32)[:, None]                # (max_len, 1)
    div_term = jnp.exp(jnp.arange(0, d_model, 2, dtype=jnp.float32)
                       * (-math.log(10000.0) / d_model))                      # (d_model/2,)
    sin = jnp.sin(position * div_term)
    cos = jnp.cos(position * div_term)
    # interleave -> pe[:, 0, 0::2] = sin, pe[:, 0, 1::2] = cos
    pe = jnp.stack([sin, cos], axis=-1).reshape(max_len, d_model)
    return pe[:, None, :]                                                     # (max_len, 1, d_model)


def _vmem_limit_bytes() -> int:
    """Generation-aware scoped-VMEM budget (v5e/v6e: 64 MiB, v7x: ~48 MiB)."""
    cap = None
    try:
        get_info = getattr(pltpu, "get_tpu_info", None)
        if get_info is not None:
            cap = getattr(get_info(), "vmem_capacity_bytes", None)
    except Exception:
        cap = None
    if not cap:
        cap = 64 * 1024 * 1024          # conservative fallback: v7x per-TensorCore VMEM
    return int(min(64 * 1024 * 1024, (int(cap) * 3) // 4))


def _pick_rows_per_tile(n_rows: int, row_bytes: int, target_tile_bytes: int) -> int:
    """Rows per tile: multiple of 8, inside the byte budget, keeping >= ~8 grid steps.

    ~4 double-buffered slabs of `target_tile_bytes` stay well inside the VMEM limit;
    the grid-balance cap keeps both v7x TensorCores streaming and the pipeline full.
    """
    if n_rows <= 8:
        return n_rows
    rows = max(8, (int(target_tile_bytes) // max(int(row_bytes), 1)) // 8 * 8)
    balance = (n_rows // 64) * 8        # ~n_rows/8, rounded down to a multiple of 8
    if balance >= 8:
        rows = min(rows, balance)
    return min(rows, n_rows)


def _pe_dropout_kernel(seed_ref, x_ref, pe_ref, out_ref, *,
                       p_drop: float, training: bool, batch: int):
    # seed_ref: (1,) int32 in SMEM.
    # x_ref / out_ref: (rows, B*D) tile of the lane-dense (S, B*D) view of x.
    # pe_ref: (rows, D) tile of the compact positional table (same row indexing).
    rows, ncols = x_ref.shape

    pe = pe_ref[...]
    if batch > 1:
        # Widen pe to (rows, B*D) in-register: lane concatenate of `batch` copies.
        # Cheap vreg/VMEM traffic (hidden under DMA) instead of a B x larger HBM stream.
        pe = jnp.concatenate([pe] * batch, axis=-1)
    y = x_ref[...] + pe                                     # stays in x dtype

    if training and 0.0 < p_drop < 1.0:
        # Counter-based PRNG: murmur3-style finalizer of the GLOBAL element index
        # (row-major over the (S, B*D) view), keyed by the seed.  All-uint32, so the
        # mask is tiling/megacore invariant and cannot overflow int32.
        row_off = pl.program_id(0) * rows                   # first global row of this tile
        base = row_off.astype(jnp.uint32) * jnp.uint32(ncols)
        r_idx = jax.lax.broadcasted_iota(jnp.int32, (rows, ncols), 0).astype(jnp.uint32)
        c_idx = jax.lax.broadcasted_iota(jnp.int32, (rows, ncols), 1).astype(jnp.uint32)
        lin = r_idx * jnp.uint32(ncols) + c_idx + base

        h = lin * jnp.uint32(0x9E3779B1) + seed_ref[0].astype(jnp.uint32)
        h = (h ^ (h >> 16)) * jnp.uint32(0x85EBCA6B)
        h = (h ^ (h >> 13)) * jnp.uint32(0xC2B2AE35)
        bits = h ^ (h >> 16)

        # keep with probability (1 - p): bits >= floor(p * 2^32), clamped for p -> 1
        thresh = jnp.uint32(min(int(p_drop * 4294967296.0), 4294967295))
        keep = bits >= thresh
        scale = 1.0 / (1.0 - p_drop)                        # Python float: keeps y.dtype (no bf16->f32)
        y = jnp.where(keep, y * scale, jnp.zeros_like(y))
    elif training and p_drop >= 1.0:
        y = jnp.zeros_like(y)                               # nn.Dropout(p=1.0) zeroes everything

    out_ref[...] = y.astype(out_ref.dtype)


def positional_encoding_forward(x: jnp.ndarray,
                                pe_table: jnp.ndarray,
                                *,
                                p_drop: float = 0.1,
                                training: bool = True,
                                seed: int = 0,
                                rows_per_tile: int | None = None,
                                force_kernel: bool = False,
                                donate_x: bool = False) -> jnp.ndarray:
    """y = dropout(x + pe[:S]).  x: (S, B, D); pe_table: (max_len, 1, D).

    The dropout mask is a deterministic function of (seed, element index); vary
    `seed` per training step to get a fresh mask.
    """
    S, B, D = x.shape
    apply_dropout = bool(training) and float(p_drop) > 0.0
    if not apply_dropout and not force_kernel:
        # Eval / p==0: a bare broadcast add -- let XLA fuse it into the consumer
        # instead of paying an extra HBM round trip through a kernel.
        return x + pe_table[:S].astype(x.dtype)

    ncols = B * D
    x2 = x.reshape(S, ncols)                       # free row-major view: lane-dense slab
    pe2 = pe_table[:S, 0, :].astype(x.dtype)       # (S, D) compact pe stream

    vmem_limit = _vmem_limit_bytes()
    if rows_per_tile is None:
        rows_per_tile = _pick_rows_per_tile(
            S, ncols * x.dtype.itemsize, target_tile_bytes=vmem_limit // 8)
    grid = (pl.cdiv(S, rows_per_tile),)            # edge block (if any) masked by Pallas

    seed_arr = jnp.asarray([seed], dtype=jnp.int32)
    kernel = functools.partial(_pe_dropout_kernel, p_drop=float(p_drop),
                               training=bool(training), batch=B)

    out2 = pl.pallas_call(
        kernel,
        out_shape=jax.ShapeDtypeStruct((S, ncols), x.dtype),
        grid=grid,
        in_specs=[
            pl.BlockSpec(memory_space=pltpu.MemorySpace.SMEM),        # seed scalar (whole array)
            pl.BlockSpec((rows_per_tile, ncols), lambda i: (i, 0)),   # x rows (lane-dense)
            pl.BlockSpec((rows_per_tile, D), lambda i: (i, 0)),       # pe rows (compact)
        ],
        out_specs=pl.BlockSpec((rows_per_tile, ncols), lambda i: (i, 0)),
        compiler_params=pltpu.CompilerParams(
            # Independent row tiles: shard across both TensorCores on v7x.
            dimension_semantics=("parallel",),
            vmem_limit_bytes=vmem_limit,
        ),
        # x (input index 1, after the seed) may alias the output to halve HBM
        # footprint; requires the caller to actually donate x (jit donate_argnums).
        input_output_aliases=({1: 0} if donate_x else {}),
    )(seed_arr, x2, pe2)
    return out2.reshape(S, B, D)


if __name__ == "__main__":
    # Small shapes consistent with the module's forward: x is (seq, batch, d_model).
    S, B, D = 8, 2, 32
    MAX_LEN = 64
    P_DROP = 0.1

    key = jax.random.PRNGKey(0)
    x = jax.random.normal(key, (S, B, D), dtype=jnp.float32)
    pe_table = _make_pe_table(D, MAX_LEN)
    ref = x + pe_table[:S]

    # Eval mode (kernel skipped, plain fused add): exact match.
    out_eval = jax.block_until_ready(
        positional_encoding_forward(x, pe_table, p_drop=P_DROP, training=False))
    assert out_eval.shape == (S, B, D)
    assert jnp.allclose(out_eval, ref, atol=1e-6), "eval-mode mismatch vs reference"

    # Same math forced through the tiled Pallas kernel (checks the broadcast-add path).
    out_kernel_eval = jax.block_until_ready(
        positional_encoding_forward(x, pe_table, p_drop=P_DROP, training=False,
                                    force_kernel=True))
    assert jnp.allclose(out_kernel_eval, ref, atol=1e-6), "kernel add mismatch vs reference"

    # Training mode: inverted dropout inside the kernel.
    out_train = jax.block_until_ready(
        positional_encoding_forward(x, pe_table, p_drop=P_DROP, training=True, seed=42))
    assert out_train.shape == (S, B, D)
    scaled_ref = ref * jnp.float32(1.0 / (1.0 - P_DROP))
    is_dropped = jnp.isclose(out_train, 0.0)
    is_kept = jnp.isclose(out_train, scaled_ref, atol=1e-5)
    assert bool(jnp.all(jnp.logical_or(is_dropped, is_kept))), \
        "training-mode dropout values inconsistent"
    drop_frac = float(jnp.mean(is_dropped.astype(jnp.float32)))
    assert 0.0 < drop_frac < 0.35, f"suspicious drop fraction {drop_frac}"

    print("KERNEL_OK")
</pallas_src>

<mosaic_0001>
module attributes {stable_mosaic.version = 11 : i64} {
  func.func @_pe_dropout_kernel(%arg0: i32, %arg1: memref<1xi32, #tpu.memory_space<smem>>, %arg2: memref<8x64xf32, #tpu.memory_space<vmem>>, %arg3: memref<8x32xf32, #tpu.memory_space<vmem>>, %arg4: memref<8x64xf32, #tpu.memory_space<vmem>>) attributes {dimension_semantics = [#tpu.dimension_semantics<parallel>], iteration_bounds = array<i64: 1>, scalar_prefetch = 0 : i64, scratch_operands = 0 : i64, tpu.core_type = #tpu.core_type<tc>, window_params = [{transform_indices = @transform_0, window_bounds = array<i64: 1>}, {transform_indices = @transform_1, window_bounds = array<i64: 8, 64>}, {transform_indices = @transform_2, window_bounds = array<i64: 8, 32>}, {transform_indices = @transform_3, window_bounds = array<i64: 8, 64>}]} {
    %c0 = arith.constant 0 : index
    %c0_0 = arith.constant 0 : index
    %0 = vector.load %arg3[%c0, %c0_0] : memref<8x32xf32, #tpu.memory_space<vmem>>, vector<8x32xf32>
    %1 = tpu.concatenate %0, %0 in 1 : vector<8x32xf32>, vector<8x32xf32> -> vector<8x64xf32>
    %c0_1 = arith.constant 0 : index
    %c0_2 = arith.constant 0 : index
    %2 = vector.load %arg2[%c0_1, %c0_2] : memref<8x64xf32, #tpu.memory_space<vmem>>, vector<8x64xf32>
    %3 = arith.addf %2, %1 : vector<8x64xf32>
    %c0_3 = arith.constant 0 : index
    %c0_4 = arith.constant 0 : index
    %4 = vector.load %arg4[%c0_3, %c0_4] : memref<8x64xf32, #tpu.memory_space<vmem>>, vector<8x64xf32>
    tpu.vector_store %arg4[%c0_3, %c0_4], %3 {strides = array<i32>} : memref<8x64xf32, #tpu.memory_space<vmem>>, vector<8x64xf32>,
    return
  }
  func.func @transform_0(%arg0: i32) -> i32 {
    %c0_i32 = arith.constant 0 : i32
    %c0_i32_0 = arith.constant 0 : i32
    return %c0_i32 : i32
  }
  func.func @transform_1(%arg0: i32) -> (i32, i32) {
    %c0_i32 = arith.constant 0 : i32
    %c0_i32_0 = arith.constant 0 : i32
    return %arg0, %c0_i32 : i32, i32
  }
  func.func @transform_2(%arg0: i32) -> (i32, i32) {
    %c0_i32 = arith.constant 0 : i32
    %c0_i32_0 = arith.constant 0 : i32
    return %arg0, %c0_i32 : i32, i32
  }
  func.func @transform_3(%arg0: i32) -> (i32, i32) {
    %c0_i32 = arith.constant 0 : i32
    %c0_i32_0 = arith.constant 0 : i32
    return %arg0, %c0_i32 : i32, i32
  }
}

</mosaic_0001>

<bundles_post_ra>
// kernel: tpu_custom_call.1
= control target key start
LH: loop header
LB: loop body
LE: loop exit
PB: predicated region body
PF: predicated region fallthrough
CT: control target
= control target key end

     0   :  { %9 = vsyncpa [#allocation4], 0  ;;  %s203_s0 = inlined_call_operand.<no memory space> [shape: s32[1], index: 0, kind: input, shape index: {}]   ;;  %s204_s1 = inlined_call_operand.hbm [shape: f32[8,64], index: 1, kind: input, shape index: {}]   ;;  %s205_s2 = inlined_call_operand.hbm [shape: f32[8,32], index: 2, kind: input, shape index: {}]   ;;  %s206_s3 = inlined_call_operand.hbm [shape: f32[8,64], index: 3, kind: output, shape index: {}]  }
   0x1   :  { %10 = vsyncpa [#allocation7], 0 }
   0x2   :  { %11 = vsyncpa [#allocation5], 0  ;;  %s143_s12 = smov [#allocation3]   ;;  %s144_s14 = smov [#allocation6]  }
   0x3   :  { %s20_s13 = sshll.u32 %s143_s12, 4  ;;  %s30_s15 = sshll.u32 %s144_s14, 4  ;;  %s21_s13 = int_to_ptr.vmem [resolvable:$true] %s20_s13  ;;  %s31_s15 = int_to_ptr.vmem [resolvable:$true] %s30_s15 }
   0x4   :  { %s71_s17 = scalar_lea.hbm %s204_s1, 128 }
   0x5   :  { %p72_p0 = scmp.ne.s32.totalorder %s204_s1, %s71_s17  ;;  %p75_p1 = scmp.lt.u32.totalorder %s71_s17, %s204_s1 }
   0x7   :  { %p77_p2 = pnand %p75_p1, %p72_p0 }
   0x9   :  { %80 = shalt.err (!%p77_p2)
}
   0xa   :  { %s81_s22 = scalar_lea.vmem %s21_s13, 128  ;;  %p86_p4 = scmp.lt.s32.totalorder %s21_s13, %s21_s13 }
   0xb   :  { %p82_p3 = scmp.ne.s32.totalorder %s21_s13, %s81_s22  ;;  %p87_p5 = scmp.lt.s32.totalorder %s81_s22, %s81_s22 }
   0xd   :  { %p88_p6 = por %p87_p5, %p86_p4 }
   0xf   :  { %p89_p7 = pnand %p88_p6, %p82_p3 }
  0x11   :  { %92 = shalt.err (!%p89_p7)
}
  0x12   :  { %23 = dma.hbm_to_vmem [thread:$0]  %s204_s1, 128, %s21_s13, [#allocation4]  }
  0x13   :  { %s93_s27 = scalar_lea.hbm %s205_s2, 128 }
  0x14   :  { %p94_p8 = scmp.ne.s32.totalorder %s205_s2, %s93_s27  ;;  %p97_p9 = scmp.lt.u32.totalorder %s93_s27, %s205_s2 }
  0x16   :  { %p99_p10 = pnand %p97_p9, %p94_p8 }
  0x18   :  { %102 = shalt.err (!%p99_p10)
}
  0x19   :  { %s103_s5 = scalar_lea.vmem %s31_s15, 128  ;;  %p108_p12 = scmp.lt.s32.totalorder %s31_s15, %s31_s15 }
  0x1a   :  { %p104_p11 = scmp.ne.s32.totalorder %s31_s15, %s103_s5  ;;  %p109_p13 = scmp.lt.s32.totalorder %s103_s5, %s103_s5 }
  0x1c   :  { %p110_p0 = por %p109_p13, %p108_p12 }
  0x1e   :  { %p111_p1 = pnand %p110_p0, %p104_p11 }
  0x20   :  { %114 = shalt.err (!%p111_p1)
}
  0x21   :  { %33 = dma.hbm_to_vmem [thread:$0]  %s205_s2, 128, %s31_s15, [#allocation7]  }
  0x22   :  { %137 = dma.done.wait [#allocation4], 128  }
  0x23   :  { %138 = vsyncadd [#allocation4], 4294967168 }
  0x24   :  { %139 = dma.done.wait [#allocation7], 128  }
  0x25   :  { %140 = vsyncadd [#allocation7], 4294967168  ;;  %v40_v0 = vld [vmem:[#allocation6] sm:$0xff]  ;;  %s145_s7 = smov 32   ;;  %vm45_vm0 = vcmask 261120   ;;  %v47_v1 = vld [vmem:[#allocation3] sm:$0xff] }
  0x26   :  { %42 = vrot.lane.b32.xlu0 %v40_v0, %s145_s7  ;;  %s146_s8 = smov [#allocation8]   ;;  %vm49_vm1 = vcmask 523264  }
  0x27   :  { %s57_s9 = sshll.u32 %s146_s8, 4  ;;  %s58_s9 = int_to_ptr.vmem [resolvable:$true] %s57_s9 }
  0x28   :  { %s115_s10 = scalar_lea.vmem %s58_s9, 128  ;;  %p120_p3 = scmp.lt.s32.totalorder %s58_s9, %s58_s9 }
  0x29   :  { %p116_p2 = scmp.ne.s32.totalorder %s58_s9, %s115_s10  ;;  %p121_p4 = scmp.lt.s32.totalorder %s115_s10, %s115_s10 }
  0x2b   :  { %p122_p5 = por %p121_p4, %p120_p3 }
  0x2d   :  { %p123_p6 = pnand %p122_p5, %p116_p2 }
  0x98   :  { %v43_v2 = vpop.permute.xlu0 %42 }
  0x99   :  { %v46_v3 = vsel %vm45_vm0, %v40_v0, %v43_v2 }
  0x9a   :  { %v48_v4 = vadd.f32 %v47_v1, %v46_v3 }
  0x9c   :  { %50 = vst.msk [vmem:[#allocation8] sm:$0xff] %vm49_vm1, %v48_v4 }
  0x9d   :  { %126 = shalt.err (!%p123_p6)
}
  0x9e   :  { %s127_s12 = scalar_lea.hbm %s206_s3, 128 }
  0x9f   :  { %p128_p7 = scmp.ne.s32.totalorder %s206_s3, %s127_s12  ;;  %p131_p8 = scmp.lt.u32.totalorder %s127_s12, %s206_s3 }
  0xa1   :  { %p133_p9 = pnand %p131_p8, %p128_p7 }
  0xa3   :  { %136 = shalt.err (!%p133_p9)
}
  0xa4   :  { %60 = dma.vmem_to_hbm [thread:$0]  %s58_s9, 128, %s206_s3, [#allocation5]  }
  0xa5   :  { %141 = dma.done.wait [#allocation5], 128  }
  0xa6   :  { %142 = vsyncadd [#allocation5], 4294967168 }
  0xa7   :  { %64 = vsyncpa [#allocation4], 1 }
  0xa8   :  { %65 = vsyncpa [#allocation7], 1 }
  0xa9   :  { %66 = vsyncpa [#allocation5], 1 }

</bundles_post_ra>
